<compile_context>
chip_gen: v7x
topology: tpu7x:2x2x1
jax: 0.10.0
libtpu: 0.0.40
codegen_flags: <defaults>
</compile_context>

<pallas_src>
import functools

import numpy as np
import jax
import jax.numpy as jnp
from jax import lax
from jax.experimental import pallas as pl
from jax.experimental.pallas import tpu as pltpu


def _clogit_kernel(xt_ref, w_ref, b_ref, seg_ref, out_ref, *, num_strata_padded):
    """Fused linear + segmented (per-stratum) softmax, all lane-dense.

    xt_ref  : (D, Np)  f32  VMEM   X transposed (features on sublanes, obs on lanes)
    w_ref   : (D, 1)   f32  VMEM   linear weight (broadcast across lanes)
    b_ref   : (1, 1)   f32  SMEM   linear bias
    seg_ref : (1, Np)  i32  VMEM   segment id per observation; -1 for padding
    out_ref : (1, Np)  f32  VMEM   softmax-within-stratum probabilities
    """
    sp = num_strata_padded
    np_lanes = xt_ref.shape[1]

    # ---- Linear layer on the VPU (no MXU for a width-1 output) ------------
    # s[j] = sum_d Xt[d, j] * w[d] + b   -> (1, Np), lane-dense.
    s_row = jnp.sum(xt_ref[...] * w_ref[...], axis=0, keepdims=True) + b_ref[0, 0]

    seg_row = seg_ref[...]                                   # (1, Np) i32
    valid = seg_row >= 0                                     # (1, Np) bool

    # membership[g, j] = (observation j belongs to stratum g)   -> (Sp, Np)
    g_iota = lax.broadcasted_iota(jnp.int32, (sp, np_lanes), 0)
    member = g_iota == seg_row

    neg_inf = jnp.float32(-jnp.inf)

    # ---- Per-stratum max, gathered back per observation --------------------
    # m_g = max_{j in g} s[j]                      -> (Sp, 1)   (lane reduce)
    m_g = jnp.max(jnp.where(member, s_row, neg_inf), axis=1, keepdims=True)
    # m_row[j] = m_{seg(j)}                        -> (1, Np)   (sublane reduce)
    m_row = jnp.max(jnp.where(member, m_g, neg_inf), axis=0, keepdims=True)

    # ---- O(N) exp ----------------------------------------------------------
    # Padded columns get -inf -> exp = 0 (keeps them out of every denominator).
    e_row = jnp.exp(jnp.where(valid, s_row - m_row, neg_inf))  # (1, Np)

    # ---- Per-stratum denominator, gathered back per observation ------------
    d_g = jnp.sum(jnp.where(member, e_row, 0.0), axis=1, keepdims=True)   # (Sp, 1)
    d_row = jnp.sum(jnp.where(member, d_g, 0.0), axis=0, keepdims=True)   # (1, Np)
    d_row = jnp.where(valid, d_row, 1.0)   # avoid 0/0 in padded lanes

    out_ref[...] = e_row / d_row


def _round_up(x, m):
    return ((x + m - 1) // m) * m


def clogit_forward(X, weight, bias, strata):
    """X: (N, D) f32; weight: (1, D); bias: (1,); strata: list of stratum lengths."""
    X = jnp.asarray(X, jnp.float32)
    N, D = X.shape
    S = len(strata)
    assert int(sum(strata)) == N

    Np = _round_up(max(N, 1), 128)   # lane-dense, unmasked-store output width
    Sp = _round_up(max(S, 1), 8)     # sublane-aligned stratum axis

    # Segment id per observation, -1 sentinel in padded lanes.
    seg_ids = np.full((Np,), -1, dtype=np.int32)
    seg_ids[:N] = np.repeat(np.arange(S, dtype=np.int32),
                            np.asarray(strata, dtype=np.int32))
    seg = jnp.asarray(seg_ids).reshape(1, Np)

    # X transposed + lane-padded (layout plumbing outside the kernel).
    Xt = jnp.zeros((D, Np), jnp.float32).at[:, :N].set(X.T)

    w = jnp.asarray(weight, jnp.float32).reshape(D, 1)       # (D, 1)
    b = jnp.asarray(bias, jnp.float32).reshape(1, 1)         # (1, 1)

    # Working-set estimate (double-buffered inputs + (Sp, Np) temporaries).
    est_bytes = 4 * (2 * D * Np + 8 * Sp * Np + 16 * Np)
    vmem_limit = int(min(64 * 1024 * 1024, max(est_bytes, 4 * 1024 * 1024)))

    out_row = pl.pallas_call(
        functools.partial(_clogit_kernel, num_strata_padded=Sp),
        out_shape=jax.ShapeDtypeStruct((1, Np), jnp.float32),
        in_specs=[
            pl.BlockSpec(memory_space=pltpu.MemorySpace.VMEM),   # Xt
            pl.BlockSpec(memory_space=pltpu.MemorySpace.VMEM),   # w
            pl.BlockSpec(memory_space=pltpu.MemorySpace.SMEM),   # b
            pl.BlockSpec(memory_space=pltpu.MemorySpace.VMEM),   # seg ids
        ],
        out_specs=pl.BlockSpec(memory_space=pltpu.MemorySpace.VMEM),
        compiler_params=pltpu.CompilerParams(vmem_limit_bytes=vmem_limit),
    )(Xt, w, b, seg)

    return out_row[0, :N]   # matches torch .squeeze() -> (N,)


def _reference(X, weight, bias, strata):
    """Pure-JAX reference of the PyTorch forward."""
    s = (X @ jnp.asarray(weight).reshape(-1, 1)).reshape(-1) + jnp.asarray(bias).reshape(())
    outs = []
    ix = 0
    for length in strata:
        outs.append(jax.nn.softmax(s[ix:ix + length], axis=0))
        ix += length
    return jnp.concatenate(outs)


if __name__ == "__main__":
    key = jax.random.PRNGKey(0)
    N, D = 8, 32
    strata = [3, 2, 3]  # stratum sizes, sum == N

    kx, kw, kb = jax.random.split(key, 3)
    X = jax.random.normal(kx, (N, D), dtype=jnp.float32)

    # Deterministic nn.Linear-style init: U(-1/sqrt(D), 1/sqrt(D))
    bound = 1.0 / np.sqrt(D)
    weight = jax.random.uniform(kw, (1, D), jnp.float32, -bound, bound)
    bias = jax.random.uniform(kb, (1,), jnp.float32, -bound, bound)

    y = clogit_forward(X, weight, bias, strata)
    y = jax.block_until_ready(y)

    y_ref = _reference(X, weight, bias, strata)
    if not jnp.allclose(y, y_ref, atol=1e-5, rtol=1e-5):
        raise AssertionError(f"mismatch: {y} vs {y_ref}")

    print("KERNEL_OK")
</pallas_src>

<mosaic_0001>
module attributes {stable_mosaic.version = 11 : i64} {
  func.func @_clogit_kernel(%arg0: memref<32x128xf32, #tpu.memory_space<vmem>>, %arg1: memref<32x1xf32, #tpu.memory_space<vmem>>, %arg2: memref<1x1xf32, #tpu.memory_space<smem>>, %arg3: memref<1x128xi32, #tpu.memory_space<vmem>>, %arg4: memref<1x128xf32, #tpu.memory_space<vmem>>) attributes {dimension_semantics = [], scalar_prefetch = 0 : i64, scratch_operands = 0 : i64, tpu.core_type = #tpu.core_type<tc>} {
    %c0 = arith.constant 0 : index
    %c0_0 = arith.constant 0 : index
    %0 = vector.load %arg0[%c0, %c0_0] : memref<32x128xf32, #tpu.memory_space<vmem>>, vector<32x128xf32>
    %c0_1 = arith.constant 0 : index
    %c0_2 = arith.constant 0 : index
    %1 = vector.load %arg1[%c0_1, %c0_2] : memref<32x1xf32, #tpu.memory_space<vmem>>, vector<32x1xf32>
    %2 = vector.broadcast %1 : vector<32x1xf32> to vector<32x128xf32>
    %3 = arith.mulf %0, %2 : vector<32x128xf32>
    %cst = arith.constant dense<0.000000e+00> : vector<128xf32>
    %4 = vector.multi_reduction <add>, %3, %cst [0] : vector<32x128xf32> to vector<128xf32>
    %5 = vector.shape_cast %4 : vector<128xf32> to vector<1x128xf32>
    %c0_3 = arith.constant 0 : index
    %c0_4 = arith.constant 0 : index
    %6 = memref.load %arg2[%c0_3, %c0_4] : memref<1x1xf32, #tpu.memory_space<smem>>
    %7 = vector.broadcast %6 : f32 to vector<1x128xf32>
    %8 = arith.addf %5, %7 : vector<1x128xf32>
    %c0_5 = arith.constant 0 : index
    %c0_6 = arith.constant 0 : index
    %9 = vector.load %arg3[%c0_5, %c0_6] : memref<1x128xi32, #tpu.memory_space<vmem>>, vector<1x128xi32>
    %c0_i32 = arith.constant 0 : i32
    %10 = vector.broadcast %c0_i32 : i32 to vector<1x128xi32>
    %11 = arith.cmpi sge, %9, %10 : vector<1x128xi32>
    %12 = tpu.iota {dimensions = array<i32: 0>} : vector<8x128xi32>
    %13 = vector.broadcast %9 : vector<1x128xi32> to vector<8x128xi32>
    %14 = arith.cmpi eq, %12, %13 : vector<8x128xi32>
    %cst_7 = arith.constant 0xFF800000 : f32
    %15 = vector.shape_cast %8 : vector<1x128xf32> to vector<1x128xf32>
    %16 = vector.broadcast %15 : vector<1x128xf32> to vector<8x128xf32>
    %17 = vector.broadcast %cst_7 : f32 to vector<8x128xf32>
    %18 = arith.select %14, %16, %17 : vector<8x128xi1>, vector<8x128xf32>
    %cst_8 = arith.constant dense<0xFF800000> : vector<8xf32>
    %19 = vector.multi_reduction <maximumf>, %18, %cst_8 [1] : vector<8x128xf32> to vector<8xf32>
    %20 = vector.shape_cast %19 : vector<8xf32> to vector<8x1xf32>
    %cst_9 = arith.constant 0xFF800000 : f32
    %21 = vector.shape_cast %20 : vector<8x1xf32> to vector<8x1xf32>
    %22 = vector.broadcast %21 : vector<8x1xf32> to vector<8x128xf32>
    %23 = vector.broadcast %cst_9 : f32 to vector<8x128xf32>
    %24 = arith.select %14, %22, %23 : vector<8x128xi1>, vector<8x128xf32>
    %cst_10 = arith.constant dense<0xFF800000> : vector<128xf32>
    %25 = vector.multi_reduction <maximumf>, %24, %cst_10 [0] : vector<8x128xf32> to vector<128xf32>
    %26 = vector.shape_cast %25 : vector<128xf32> to vector<1x128xf32>
    %27 = arith.subf %8, %26 : vector<1x128xf32>
    %cst_11 = arith.constant 0xFF800000 : f32
    %28 = vector.broadcast %cst_11 : f32 to vector<1x128xf32>
    %29 = arith.select %11, %27, %28 : vector<1x128xi1>, vector<1x128xf32>
    %30 = math.exp %29 : vector<1x128xf32>
    %cst_12 = arith.constant 0.000000e+00 : f32
    %31 = vector.shape_cast %30 : vector<1x128xf32> to vector<1x128xf32>
    %32 = vector.broadcast %31 : vector<1x128xf32> to vector<8x128xf32>
    %33 = vector.broadcast %cst_12 : f32 to vector<8x128xf32>
    %34 = arith.select %14, %32, %33 : vector<8x128xi1>, vector<8x128xf32>
    %cst_13 = arith.constant dense<0.000000e+00> : vector<8xf32>
    %35 = vector.multi_reduction <add>, %34, %cst_13 [1] : vector<8x128xf32> to vector<8xf32>
    %36 = vector.shape_cast %35 : vector<8xf32> to vector<8x1xf32>
    %cst_14 = arith.constant 0.000000e+00 : f32
    %37 = vector.shape_cast %36 : vector<8x1xf32> to vector<8x1xf32>
    %38 = vector.broadcast %37 : vector<8x1xf32> to vector<8x128xf32>
    %39 = vector.broadcast %cst_14 : f32 to vector<8x128xf32>
    %40 = arith.select %14, %38, %39 : vector<8x128xi1>, vector<8x128xf32>
    %cst_15 = arith.constant dense<0.000000e+00> : vector<128xf32>
    %41 = vector.multi_reduction <add>, %40, %cst_15 [0] : vector<8x128xf32> to vector<128xf32>
    %42 = vector.shape_cast %41 : vector<128xf32> to vector<1x128xf32>
    %cst_16 = arith.constant 1.000000e+00 : f32
    %43 = vector.broadcast %cst_16 : f32 to vector<1x128xf32>
    %44 = arith.select %11, %42, %43 : vector<1x128xi1>, vector<1x128xf32>
    %45 = arith.divf %30, %44 : vector<1x128xf32>
    %c0_17 = arith.constant 0 : index
    %c0_18 = arith.constant 0 : index
    %46 = vector.load %arg4[%c0_17, %c0_18] : memref<1x128xf32, #tpu.memory_space<vmem>>, vector<1x128xf32>
    tpu.vector_store %arg4[%c0_17, %c0_18], %45 {strides = array<i32>} : memref<1x128xf32, #tpu.memory_space<vmem>>, vector<1x128xf32>,
    return
  }
}

</mosaic_0001>

<bundles_post_ra>
// kernel: tpu_custom_call.1
= control target key start
LH: loop header
LB: loop body
LE: loop exit
PB: predicated region body
PF: predicated region fallthrough
CT: control target
= control target key end

     0   :  { %v152_v2 = vmov 0   ;;  %s227_s0 = inlined_call_operand.vmem [shape: f32[32,128], index: 0, kind: input, shape index: {}]   ;;  %s228_s1 = inlined_call_operand.vmem [shape: f32[32,1], index: 1, kind: input, shape index: {}]   ;;  %s229_s2 = inlined_call_operand.<no memory space> [shape: f32[1,1], index: 2, kind: input, shape index: {}]   ;;  %s230_s3 = inlined_call_operand.vmem [shape: s32[1,128], index: 3, kind: input, shape index: {}]   ;;  %s231_s4 = inlined_call_operand.hbm [shape: f32[1,128], index: 4, kind: output, shape index: {}]  }
   0x1   :  { %v25_v0 = vld [vmem:[%s228_s1 + $0x10] sm:$0xff]  ;;  %v23_v1 = vld [vmem:[%s228_s1] sm:$0xff]  ;;  %123 = vset.pattern.permute.xlu1 %v152_v2  ;;  %122 = vset.pattern.permute.xlu0 %v152_v2 }
   0x2   :  { %39 = vperm.xlu1 %123, %v25_v0   ;;  %29 = vperm.xlu0 %122, %v23_v1  }
   0x3   :  { %10 = vsyncpa [#allocation4], 0  ;;  %v26_v3 = vld [vmem:[%s228_s1 + $0x18] sm:$0xff]  ;;  %v24_v4 = vld [vmem:[%s228_s1 + $0x8] sm:$0xff]  ;;  %v65_v17 = vlaneseq  ;;  %v61_v30 = vstv %s229_s2  ;;  %s153_s2 = smov [#allocation3]  }
   0x4   :  { %v19_v7 = vld [vmem:[%s227_s0] sm:$0xff]  ;;  %v20_v8 = vld [vmem:[%s227_s0 + $0x8] sm:$0xff]  ;;  %v21_v9 = vld [vmem:[%s227_s0 + $0x10] sm:$0xff] }
   0x5   :  { %v22_v14 = vld [vmem:[%s227_s0 + $0x18] sm:$0xff]  ;;  %v66_v21 = vshrl.u32 %v65_v17, 7  ;;  %v63_v26 = vld [vmem:[%s230_s3] sm:$0x1]  ;;  %s112_s3 = sshll.u32 %s153_s2, 4  ;;  %s113_s3 = int_to_ptr.vmem [resolvable:$true] %s112_s3 }
   0x6   :  { %44 = vperm.xlu1 %123, %v26_v3   ;;  %34 = vperm.xlu0 %122, %v24_v4   ;;  %vm64_vm1 = vcmp.ge.s32.totalorder %v63_v26, 0  ;;  %s128_s7 = scalar_lea.vmem %s113_s3, 16  ;;  %s132_s8 = scalar_lea.vmem %s113_s3, 32 }
   0x7   :  { %v69_v24 = vsub.s32 0, %v66_v21  ;;  %p129_p0 = scmp.ne.s32.totalorder %s113_s3, %s128_s7  ;;  %p133_p1 = scmp.lt.s32.totalorder %s113_s3, %s113_s3 }
   0x8   :  { %p134_p2 = scmp.lt.s32.totalorder %s132_s8, %s128_s7 }
   0x9   :  { %v70_v28 = vrot.slane %v63_v26, %v69_v24 }
   0xa   :  { %p135_p3 = por %p134_p2, %p133_p1 }
   0xb   :  { %vm71_vm0 = vcmp.eq.s32.totalorder %v66_v21, %v70_v28 }
   0xc   :  { %p136_p4 = pnand %p135_p3, %p129_p0 }
  0x81   :  { %v40_v5 = vpop.permute.xlu1 %39  ;;  %v30_v6 = vpop.permute.xlu0 %29 }
  0x82   :  { %v47_v11 = vmul.f32 %v30_v6, %v19_v7  ;;  %v49_v15 = vmul.f32 %v40_v5, %v21_v9 }
  0x85   :  { %v35_v10 = vpop.permute.xlu0 %34  ;;  %v45_v13 = vpop.permute.xlu1 %44 }
  0x86   :  { %v48_v12 = vmul.f32 %v35_v10, %v20_v8  ;;  %v50_v18 = vmul.f32 %v45_v13, %v22_v14 }
  0x88   :  { %v51_v16 = vadd.f32 %v48_v12, %v47_v11 }
  0x8a   :  { %v52_v19 = vadd.f32 %v51_v16, %v49_v15 }
  0x8c   :  { %v53_v20 = vadd.f32 %v52_v19, %v50_v18 }
  0x8e   :  { %v54_v22 = vrot.slane %v53_v20, 4 }
  0x90   :  { %v55_v23 = vadd.f32 %v54_v22, %v53_v20 }
  0x92   :  { %v56_v25 = vrot.slane %v55_v23, 2 }
  0x94   :  { %v57_v27 = vadd.f32 %v56_v25, %v55_v23 }
  0x96   :  { %v58_v29 = vrot.slane %v57_v27, 1 }
  0x98   :  { %v59_v31 = vadd.f32 %v58_v29, %v57_v27 }
  0x9a   :  { %v62_v32 = vadd.f32 %v61_v30, %v59_v31 }
  0x9c   :  { %v72_v33 = vsel %vm71_vm0, %v62_v32, -inf }
  0x9d   :  { %73 = vmax.xlane.f32.xlu0 %v72_v33 }
 0x12a   :  { %v74_v34 = vpop.xlane.xlu0 %73 }
 0x12b   :  { %v75_v35 = vsel %vm71_vm0, %v74_v34, -inf }
 0x12c   :  { %v76_v36 = vrot.slane %v75_v35, 4 }
 0x12e   :  { %v77_v37 = vmax.f32 %v75_v35, %v76_v36 }
 0x130   :  { %v78_v38 = vrot.slane %v77_v37, 2 }
 0x132   :  { %v79_v39 = vmax.f32 %v77_v37, %v78_v38 }
 0x134   :  { %v80_v40 = vrot.slane %v79_v39, 1 }
 0x136   :  { %v81_v41 = vmax.f32 %v79_v39, %v80_v40 }
 0x138   :  { %v82_v42 = vsub.f32 %v62_v32, %v81_v41 }
 0x13a   :  { %v83_v43 = vsel %vm64_vm1, %v82_v42, -inf }
 0x13b   :  { %v84_v44 = vmul.f32 1.442695, %v83_v43 }
 0x13d   :  { %124 = vpow2.f32 %v84_v44 }
 0x147   :  { %v125_v45 = vpop.eup %124 }
 0x148   :  { %v90_v46 = vrot.slane %v125_v45, %v69_v24 }
 0x14a   :  { %v92_v47 = vsel %vm71_vm0, %v90_v46, 0.0 }
 0x14b   :  { %93 = vadd.xlane.f32.xlu1 %v92_v47 }
 0x1d8   :  { %v94_v48 = vpop.xlane.xlu1 %93 }
 0x1d9   :  { %v95_v49 = vsel %vm71_vm0, %v94_v48, 0.0 }
 0x1da   :  { %v96_v50 = vrot.slane %v95_v49, 4 }
 0x1dc   :  { %v97_v51 = vadd.f32 %v96_v50, %v95_v49 }
 0x1de   :  { %v98_v52 = vrot.slane %v97_v51, 2 }
 0x1e0   :  { %v99_v53 = vadd.f32 %v98_v52, %v97_v51 }
 0x1e2   :  { %v100_v54 = vrot.slane %v99_v53, 1 }
 0x1e4   :  { %v101_v55 = vadd.f32 %v100_v54, %v99_v53 }
 0x1e6   :  { %v102_v56 = vsel %vm64_vm1, %v101_v55, 1.0 }
 0x1e7   :  { %126 = vrcp.f32 %v102_v56 }
 0x1f1   :  { %v127_v57 = vpop.eup %126 }
 0x1f2   :  { %v104_v58 = vmul.f32 %v127_v57, %v125_v45 }
 0x1f4   :  { %105 = vst [vmem:[#allocation3] sm:$0x1] %v104_v58 }
 0x1f5   :  { %139 = shalt.err (!%p136_p4)
}
 0x1f6   :  { %s140_s11 = scalar_lea.hbm %s231_s4, 16 }
 0x1f7   :  { %p141_p5 = scmp.ne.s32.totalorder %s231_s4, %s140_s11  ;;  %p144_p6 = scmp.lt.u32.totalorder %s140_s11, %s231_s4 }
 0x1f9   :  { %p146_p7 = pnand %p144_p6, %p141_p5 }
 0x1fb   :  { %149 = shalt.err (!%p146_p7)
}
 0x1fc   :  { %115 = dma.vmem_to_hbm [thread:$0]  %s113_s3, 16, %s231_s4, [#allocation4]  }
 0x1fd   :  { %150 = dma.done.wait [#allocation4], 16  }
 0x1fe   :  { %151 = vsyncadd [#allocation4], 4294967280 }
 0x1ff   :  { %119 = vsyncpa [#allocation4], 1 }

</bundles_post_ra>
